<compile_context>
chip_gen: v7x
topology: tpu7x:2x2x1
jax: 0.10.0
libtpu: 0.0.40
codegen_flags: <defaults>
</compile_context>

<pallas_src>
import functools

import jax
import jax.numpy as jnp
from jax.experimental import pallas as pl
from jax.experimental.pallas import tpu as pltpu

LANE = 128
GEM_EPS = 1e-6
BN_EPS = 1e-5


def _round_up(x, m):
    return (x + m - 1) // m * m


def _pick_spatial_tile(s, cap=2048):
    """Largest spatial chunk <= cap that divides s (multiple of 8 when tiled)."""
    if s <= cap:
        return s
    start = cap - cap % 8
    for ts in range(start, 7, -8):
        if s % ts == 0:
            return ts
    return s


# ---------------------------------------------------------------------------
# Fused Pallas kernel: conv3x3+ReLU (im2col matmul) -> GeM(p=3) -> affine head
# ---------------------------------------------------------------------------
def _fused_conv_gem_head_kernel(p_ref, wc_ref, bc_ref, wh_ref, bh_ref,
                                o_ref, acc_ref, *, inv_s):
    # p_ref:  (TS, KP)     bf16  im2col patch chunk of one image
    # wc_ref: (KP, CoutP)  bf16  packed 3x3 conv weight (taps folded into K)
    # bc_ref: (1, CoutP)   f32   conv bias
    # wh_ref: (CoutP, KO)  bf16  folded Linear->BN->Linear weight
    # bh_ref: (1, KO)      f32   folded head bias
    # o_ref:  (1, KO)      f32   per-image logits (resident across spatial axis)
    # acc_ref:(1, CoutP)   f32   running sum over spatial of clamp(relu(conv))^3
    j = pl.program_id(1)

    @pl.when(j == 0)
    def _():
        acc_ref[...] = jnp.zeros_like(acc_ref)

    # Single full-K, lane-dense MXU pass; f32 accumulation.
    feat = jnp.dot(p_ref[...], wc_ref[...], preferred_element_type=jnp.float32)
    feat = jnp.maximum(feat + bc_ref[...], 0.0)          # conv bias + ReLU
    x = jnp.maximum(feat, GEM_EPS)                       # GeM clamp(min=eps)
    acc_ref[...] += jnp.sum(x * x * x, axis=0, keepdims=True)   # cube via muls

    @pl.when(j == pl.num_programs(1) - 1)
    def _():
        mean = acc_ref[...] * inv_s                      # (1, CoutP)
        pooled = jnp.exp(jnp.log(mean) * (1.0 / 3.0))    # cube root, tiny tensor
        o_ref[...] = (jnp.dot(pooled.astype(jnp.bfloat16), wh_ref[...],
                              preferred_element_type=jnp.float32) + bh_ref[...])


# ---------------------------------------------------------------------------
# Wrapper: host-side layout, im2col tap packing, BN/Linear folding
# ---------------------------------------------------------------------------
def gem_pool_cnn_forward(images, conv_w, conv_b, lin1_w, lin1_b,
                         bn_gamma, bn_beta, bn_mean, bn_var, cls_w, cls_b):
    """Conv3x3+ReLU backbone stand-in -> GemPool2d(p=3) -> Linear -> BN -> Linear."""
    N, Cin, H, W = images.shape
    Cout = conv_w.shape[0]
    K = cls_w.shape[0]
    S = H * W
    KIN = 9 * Cin                       # packed contraction: taps x channels
    KP = _round_up(KIN, LANE)
    CoutP = _round_up(Cout, LANE)
    KO = _round_up(K, LANE)

    # im2col: (N, S, 9*Cin) padded to 128 lanes, bf16 (single host-side cast).
    x = jnp.transpose(images, (0, 2, 3, 1)).astype(jnp.float32)   # NHWC
    xp = jnp.pad(x, ((0, 0), (1, 1), (1, 1), (0, 0)))             # spatial pad 1
    taps = [xp[:, dh:dh + H, dw:dw + W, :]
            for dh in range(3) for dw in range(3)]                # tap t = dh*3+dw
    patches = jnp.stack(taps, axis=3).reshape(N, S, KIN)
    patches = jnp.pad(patches, ((0, 0), (0, 0), (0, KP - KIN))).astype(jnp.bfloat16)

    # Conv weight (Cout, Cin, 3, 3) -> packed (KP, CoutP); row = t*Cin + ci.
    w_conv = jnp.transpose(conv_w, (2, 3, 1, 0)).reshape(KIN, Cout)
    w_conv = jnp.pad(w_conv, ((0, KP - KIN), (0, CoutP - Cout))).astype(jnp.bfloat16)
    b_conv = jnp.pad(conv_b, (0, CoutP - Cout)).reshape(1, CoutP).astype(jnp.float32)

    # Fold eval-mode BN into the first Linear, then compose the two Linears:
    #   logits = pooled @ W_head + b_head
    scale = bn_gamma / jnp.sqrt(bn_var + BN_EPS)
    shift = bn_beta - bn_mean * scale
    w_head = (lin1_w.T * scale[None, :]) @ cls_w.T                # (C, K)
    b_head = (lin1_b * scale + shift) @ cls_w.T + cls_b           # (K,)
    # Padded feature channels pool to eps but hit zero rows of w_head -> no-op.
    w_head = jnp.pad(w_head, ((0, CoutP - Cout), (0, KO - K))).astype(jnp.bfloat16)
    b_head = jnp.pad(b_head, (0, KO - K)).reshape(1, KO).astype(jnp.float32)

    TS = _pick_spatial_tile(S)          # spatial chunk; keeps VMEM bounded on v7x
    grid = (N, S // TS)                 # batch (parallel) x spatial (reduction)

    cost = pl.CostEstimate(
        flops=2 * N * S * KIN * Cout + 4 * N * S * Cout + 2 * N * Cout * K,
        transcendentals=2 * N * CoutP,
        bytes_accessed=int(patches.size) * 2 + int(w_conv.size) * 2
                       + int(w_head.size) * 2 + (CoutP + KO) * 4 + N * KO * 4,
    )
    out = pl.pallas_call(
        functools.partial(_fused_conv_gem_head_kernel, inv_s=1.0 / S),
        out_shape=jax.ShapeDtypeStruct((N, 1, KO), jnp.float32),
        grid=grid,
        in_specs=[
            pl.BlockSpec((None, TS, KP), lambda n, j: (n, j, 0)),
            pl.BlockSpec((KP, CoutP), lambda n, j: (0, 0)),
            pl.BlockSpec((1, CoutP), lambda n, j: (0, 0)),
            pl.BlockSpec((CoutP, KO), lambda n, j: (0, 0)),
            pl.BlockSpec((1, KO), lambda n, j: (0, 0)),
        ],
        out_specs=pl.BlockSpec((None, 1, KO), lambda n, j: (n, 0, 0)),
        scratch_shapes=[pltpu.VMEM((1, CoutP), jnp.float32)],
        compiler_params=pltpu.CompilerParams(
            dimension_semantics=("parallel", "arbitrary")),
        cost_estimate=cost,
    )(patches, w_conv, b_conv, w_head, b_head)
    return out[:, 0, :K]                # strip padded logit lanes


# ---------------------------------------------------------------------------
# Pure-JAX f32 reference (for validation only)
# ---------------------------------------------------------------------------
def _reference_forward(images, conv_w, conv_b, lin1_w, lin1_b,
                       bn_gamma, bn_beta, bn_mean, bn_var, cls_w, cls_b):
    feat = jax.lax.conv_general_dilated(
        images, conv_w, window_strides=(1, 1), padding="SAME",
        dimension_numbers=("NCHW", "OIHW", "NCHW"))
    feat = jnp.maximum(feat + conv_b[None, :, None, None], 0.0)
    x = jnp.maximum(feat, GEM_EPS)
    pooled = jnp.mean(x ** 3.0, axis=(2, 3)) ** (1.0 / 3.0)
    emb = pooled @ lin1_w.T + lin1_b
    emb = (emb - bn_mean) / jnp.sqrt(bn_var + BN_EPS) * bn_gamma + bn_beta
    return emb @ cls_w.T + cls_b


# ---------------------------------------------------------------------------
# Main
# ---------------------------------------------------------------------------
if __name__ == "__main__":
    key = jax.random.PRNGKey(0)
    ks = jax.random.split(key, 11)

    N, Cin, H, W = 2, 3, 16, 16
    num_features, embeddings_dim, num_classes = 32, 32, 8

    images = jax.random.normal(ks[0], (N, Cin, H, W), jnp.float32)

    # Deterministic synthetic parameters (no checkpoint load).
    conv_w = 0.1 * jax.random.normal(ks[1], (num_features, Cin, 3, 3), jnp.float32)
    conv_b = 0.1 * jax.random.normal(ks[2], (num_features,), jnp.float32)
    lin1_w = 0.1 * jax.random.normal(ks[3], (embeddings_dim, num_features), jnp.float32)
    lin1_b = 0.1 * jax.random.normal(ks[4], (embeddings_dim,), jnp.float32)
    bn_gamma = 1.0 + 0.1 * jax.random.normal(ks[5], (embeddings_dim,), jnp.float32)
    bn_beta = 0.1 * jax.random.normal(ks[6], (embeddings_dim,), jnp.float32)
    bn_mean = 0.1 * jax.random.normal(ks[7], (embeddings_dim,), jnp.float32)
    bn_var = jnp.abs(1.0 + 0.1 * jax.random.normal(ks[8], (embeddings_dim,), jnp.float32))
    cls_w = 0.1 * jax.random.normal(ks[9], (num_classes, embeddings_dim), jnp.float32)
    cls_b = 0.1 * jax.random.normal(ks[10], (num_classes,), jnp.float32)

    # TODO(synk): the real timm pretrained backbone (create_model(...)) is not
    # reproducible here; a single Conv3x3+ReLU stand-in producing
    # `num_features` channels stands in for it.
    logits = gem_pool_cnn_forward(images, conv_w, conv_b, lin1_w, lin1_b,
                                  bn_gamma, bn_beta, bn_mean, bn_var,
                                  cls_w, cls_b)          # (N, num_classes)
    logits = jax.block_until_ready(logits)

    ref = _reference_forward(images, conv_w, conv_b, lin1_w, lin1_b,
                             bn_gamma, bn_beta, bn_mean, bn_var, cls_w, cls_b)

    assert logits.shape == (N, num_classes)
    assert bool(jnp.all(jnp.isfinite(logits)))
    max_err = float(jnp.max(jnp.abs(logits - ref)))
    assert max_err < 3e-2, f"max abs error vs f32 reference: {max_err}"
    print("KERNEL_OK")
</pallas_src>

<mosaic_0001>
module attributes {stable_mosaic.version = 11 : i64} {
  func.func @_fused_conv_gem_head_kernel(%arg0: i32, %arg1: i32, %arg2: memref<1x256x128xbf16, #tpu.memory_space<vmem>>, %arg3: memref<128x128xbf16, #tpu.memory_space<vmem>>, %arg4: memref<1x128xf32, #tpu.memory_space<vmem>>, %arg5: memref<128x128xbf16, #tpu.memory_space<vmem>>, %arg6: memref<1x128xf32, #tpu.memory_space<vmem>>, %arg7: memref<1x1x128xf32, #tpu.memory_space<vmem>>, %arg8: memref<1x128xf32, #tpu.memory_space<vmem>>) attributes {dimension_semantics = [#tpu.dimension_semantics<parallel>, #tpu.dimension_semantics<arbitrary>], iteration_bounds = array<i64: 2, 1>, scalar_prefetch = 0 : i64, scratch_operands = 1 : i64, tpu.core_type = #tpu.core_type<tc>, window_params = [{transform_indices = @transform_0, window_bounds = array<i64: 1, 256, 128>}, {pipeline_mode = #tpu.pipeline_mode<synchronous>, transform_indices = @transform_1, window_bounds = array<i64: 128, 128>}, {pipeline_mode = #tpu.pipeline_mode<synchronous>, transform_indices = @transform_2, window_bounds = array<i64: 1, 128>}, {pipeline_mode = #tpu.pipeline_mode<synchronous>, transform_indices = @transform_3, window_bounds = array<i64: 128, 128>}, {pipeline_mode = #tpu.pipeline_mode<synchronous>, transform_indices = @transform_4, window_bounds = array<i64: 1, 128>}, {transform_indices = @transform_5, window_bounds = array<i64: 1, 1, 128>}]} {
    %c0_i32 = arith.constant 0 : i32
    %0 = arith.cmpi eq, %arg1, %c0_i32 : i32
    %1 = arith.extui %0 : i1 to i32
    %c0_i32_0 = arith.constant 0 : i32
    %2 = arith.cmpi ne, %1, %c0_i32_0 : i32
    scf.if %2 {
      %cst_16 = arith.constant 0.000000e+00 : f32
      %24 = vector.broadcast %cst_16 : f32 to vector<1x128xf32>
      %c0_17 = arith.constant 0 : index
      %c0_18 = arith.constant 0 : index
      %25 = vector.load %arg8[%c0_17, %c0_18] : memref<1x128xf32, #tpu.memory_space<vmem>>, vector<1x128xf32>
      tpu.vector_store %arg8[%c0_17, %c0_18], %24 {strides = array<i32>} : memref<1x128xf32, #tpu.memory_space<vmem>>, vector<1x128xf32>,
    } else {
    }
    %c0 = arith.constant 0 : index
    %c0_1 = arith.constant 0 : index
    %c0_2 = arith.constant 0 : index
    %3 = vector.load %arg2[%c0, %c0_1, %c0_2] : memref<1x256x128xbf16, #tpu.memory_space<vmem>>, vector<1x256x128xbf16>
    %4 = vector.shape_cast %3 : vector<1x256x128xbf16> to vector<256x128xbf16>
    %c0_3 = arith.constant 0 : index
    %c0_4 = arith.constant 0 : index
    %5 = vector.load %arg3[%c0_3, %c0_4] : memref<128x128xbf16, #tpu.memory_space<vmem>>, vector<128x128xbf16>
    %cst = arith.constant dense<0.000000e+00> : vector<256x128xf32>
    %6 = tpu.matmul %4, %5, %cst {dimension_numbers = #tpu.dot_dimension_numbers<[1], [0], [0], [1], [0, 0, 1, 1], [], []>} : vector<256x128xbf16>, vector<128x128xbf16>, vector<256x128xf32> -> vector<256x128xf32>
    %c0_5 = arith.constant 0 : index
    %c0_6 = arith.constant 0 : index
    %7 = vector.load %arg4[%c0_5, %c0_6] : memref<1x128xf32, #tpu.memory_space<vmem>>, vector<1x128xf32>
    %8 = vector.broadcast %7 : vector<1x128xf32> to vector<256x128xf32>
    %9 = arith.addf %6, %8 : vector<256x128xf32>
    %cst_7 = arith.constant 0.000000e+00 : f32
    %10 = vector.broadcast %cst_7 : f32 to vector<256x128xf32>
    %11 = arith.maximumf %9, %10 : vector<256x128xf32>
    %cst_8 = arith.constant 9.99999997E-7 : f32
    %12 = vector.broadcast %cst_8 : f32 to vector<256x128xf32>
    %13 = arith.maximumf %11, %12 : vector<256x128xf32>
    %c0_9 = arith.constant 0 : index
    %c0_10 = arith.constant 0 : index
    %14 = vector.load %arg8[%c0_9, %c0_10] : memref<1x128xf32, #tpu.memory_space<vmem>>, vector<1x128xf32>
    %15 = arith.mulf %13, %13 : vector<256x128xf32>
    %16 = arith.mulf %15, %13 : vector<256x128xf32>
    %cst_11 = arith.constant dense<0.000000e+00> : vector<128xf32>
    %17 = vector.multi_reduction <add>, %16, %cst_11 [0] : vector<256x128xf32> to vector<128xf32>
    %18 = vector.shape_cast %17 : vector<128xf32> to vector<1x128xf32>
    %19 = arith.addf %14, %18 : vector<1x128xf32>
    %c0_12 = arith.constant 0 : index
    %c0_13 = arith.constant 0 : index
    %20 = vector.load %arg8[%c0_12, %c0_13] : memref<1x128xf32, #tpu.memory_space<vmem>>, vector<1x128xf32>
    tpu.vector_store %arg8[%c0_12, %c0_13], %19 {strides = array<i32>} : memref<1x128xf32, #tpu.memory_space<vmem>>, vector<1x128xf32>,
    %c0_i32_14 = arith.constant 0 : i32
    %21 = arith.cmpi eq, %arg1, %c0_i32_14 : i32
    %22 = arith.extui %21 : i1 to i32
    %c0_i32_15 = arith.constant 0 : i32
    %23 = arith.cmpi ne, %22, %c0_i32_15 : i32
    scf.if %23 {
      %c0_16 = arith.constant 0 : index
      %c0_17 = arith.constant 0 : index
      %24 = vector.load %arg8[%c0_16, %c0_17] : memref<1x128xf32, #tpu.memory_space<vmem>>, vector<1x128xf32>
      %cst_18 = arith.constant 3.906250e-03 : f32
      %25 = vector.broadcast %cst_18 : f32 to vector<1x128xf32>
      %26 = arith.mulf %24, %25 : vector<1x128xf32>
      %27 = math.log %26 : vector<1x128xf32>
      %cst_19 = arith.constant 0.333333343 : f32
      %28 = vector.broadcast %cst_19 : f32 to vector<1x128xf32>
      %29 = arith.mulf %27, %28 : vector<1x128xf32>
      %30 = math.exp %29 : vector<1x128xf32>
      %31 = arith.truncf %30 : vector<1x128xf32> to vector<1x128xbf16>
      %c0_20 = arith.constant 0 : index
      %c0_21 = arith.constant 0 : index
      %32 = vector.load %arg5[%c0_20, %c0_21] : memref<128x128xbf16, #tpu.memory_space<vmem>>, vector<128x128xbf16>
      %cst_22 = arith.constant dense<0.000000e+00> : vector<1x128xf32>
      %33 = tpu.matmul %31, %32, %cst_22 {dimension_numbers = #tpu.dot_dimension_numbers<[1], [0], [0], [1], [0, 0, 1, 1], [], []>} : vector<1x128xbf16>, vector<128x128xbf16>, vector<1x128xf32> -> vector<1x128xf32>
      %c0_23 = arith.constant 0 : index
      %c0_24 = arith.constant 0 : index
      %34 = vector.load %arg6[%c0_23, %c0_24] : memref<1x128xf32, #tpu.memory_space<vmem>>, vector<1x128xf32>
      %35 = arith.addf %33, %34 : vector<1x128xf32>
      %c0_25 = arith.constant 0 : index
      %c0_26 = arith.constant 0 : index
      %c0_27 = arith.constant 0 : index
      %36 = vector.load %arg7[%c0_25, %c0_26, %c0_27] : memref<1x1x128xf32, #tpu.memory_space<vmem>>, vector<1x1x128xf32>
      %37 = vector.shape_cast %36 : vector<1x1x128xf32> to vector<1x128xf32>
      %38 = vector.shape_cast %35 : vector<1x128xf32> to vector<1x1x128xf32>
      tpu.vector_store %arg7[%c0_25, %c0_26, %c0_27], %38 {strides = array<i32>} : memref<1x1x128xf32, #tpu.memory_space<vmem>>, vector<1x1x128xf32>,
    } else {
    }
    return
  }
  func.func @transform_0(%arg0: i32, %arg1: i32) -> (i32, i32, i32) {
    %c0_i32 = arith.constant 0 : i32
    %c0_i32_0 = arith.constant 0 : i32
    return %arg0, %arg1, %c0_i32 : i32, i32, i32
  }
  func.func @transform_1(%arg0: i32, %arg1: i32) -> (i32, i32) {
    %c0_i32 = arith.constant 0 : i32
    %c0_i32_0 = arith.constant 0 : i32
    %c0_i32_1 = arith.constant 0 : i32
    return %c0_i32, %c0_i32_0 : i32, i32
  }
  func.func @transform_2(%arg0: i32, %arg1: i32) -> (i32, i32) {
    %c0_i32 = arith.constant 0 : i32
    %c0_i32_0 = arith.constant 0 : i32
    %c0_i32_1 = arith.constant 0 : i32
    return %c0_i32, %c0_i32_0 : i32, i32
  }
  func.func @transform_3(%arg0: i32, %arg1: i32) -> (i32, i32) {
    %c0_i32 = arith.constant 0 : i32
    %c0_i32_0 = arith.constant 0 : i32
    %c0_i32_1 = arith.constant 0 : i32
    return %c0_i32, %c0_i32_0 : i32, i32
  }
  func.func @transform_4(%arg0: i32, %arg1: i32) -> (i32, i32) {
    %c0_i32 = arith.constant 0 : i32
    %c0_i32_0 = arith.constant 0 : i32
    %c0_i32_1 = arith.constant 0 : i32
    return %c0_i32, %c0_i32_0 : i32, i32
  }
  func.func @transform_5(%arg0: i32, %arg1: i32) -> (i32, i32, i32) {
    %c0_i32 = arith.constant 0 : i32
    %c0_i32_0 = arith.constant 0 : i32
    %c0_i32_1 = arith.constant 0 : i32
    return %arg0, %c0_i32, %c0_i32_0 : i32, i32, i32
  }
}

</mosaic_0001>

<bundles_post_ra>
// kernel: tpu_custom_call.1
= control target key start
LH: loop header
LB: loop body
LE: loop exit
PB: predicated region body
PF: predicated region fallthrough
CT: control target
= control target key end

     0   :  { %10 = vsyncpa [#allocation4], 0  ;;  %s1855_s0 = inlined_call_operand.hbm [shape: bf16[2,256,128], index: 0, kind: input, shape index: {}]   ;;  %s1856_s1 = inlined_call_operand.hbm [shape: bf16[128,128], index: 1, kind: input, shape index: {}]   ;;  %s1857_s2 = inlined_call_operand.vmem [shape: f32[1,128], index: 2, kind: input, shape index: {}]   ;;  %s1858_s3 = inlined_call_operand.hbm [shape: bf16[128,128], index: 3, kind: input, shape index: {}]   ;;  %s1859_s4 = inlined_call_operand.vmem [shape: f32[1,128], index: 4, kind: input, shape index: {}]   ;;  %s1860_s5 = inlined_call_operand.hbm [shape: f32[2,1,128], index: 5, kind: output, shape index: {}]  }
   0x1   :  { %12 = vsyncpa [#allocation4 + $0x1], 0 }
   0x2   :  { %13 = vsyncpa [#allocation7], 0 }
   0x3   :  { %14 = vsyncpa [#allocation5], 0 }
   0x4   :  { %16 = vsyncpa [#allocation5 + $0x1], 0  ;;  %s1534_s18 = smov 0   ;;  %s1536_s19 = smov 0  }
   0x5   :  { %s1538_s20 = smov 0   ;;  %s1540_s21 = smov 0  }
   0x6   :  { %s1542_s22 = smov 0   ;;  %s1544_s23 = smov 0  }
   0x7 LB: > { %s1048_s24 = sadd.s32 4294967295, %s1494_s23   ;;  %s1049_s25 = sadd.s32 4294967294, %s1494_s23   ;;  %s1494_s23 = sphi %s1544_s23, %s22_s23   ;;  %s1490_s22 = sphi %s1542_s22, %s1884_s22   ;;  %s1486_s21 = sphi %s1540_s21, %s1883_s21   ;;  %s1482_s20 = sphi %s1538_s20, %s1882_s20   ;;  %s1478_s19 = sphi %s1536_s19, %s1881_s19   ;;  %s1474_s18 = sphi %s1534_s18, %s1880_s18  }
   0x8   : > { %p56_p0 = scmp.ne.s32.totalorder %s1478_s19, %s1474_s18  ;;  %p1568_p1 = scmp.eq.s32.totalorder %s1048_s24, 0 }
   0x9   : > { %p1572_p2 = scmp.eq.s32.totalorder %s1048_s24, 1  ;;  %p170_p3 = scmp.eq.s32.totalorder %s1049_s25, 1 }
   0xa   : > { %s1866_s26 = scalar_select %p1568_p1, 1, 0 }
   0xb   : > { %p1578_p4 = por %p1568_p1, %p56_p0  ;;  %p1050_p5 = scmp.ge.s32.totalorder %s1494_s23, 1 }
   0xc   : > { %p1583_p6 = por %p170_p3, %p56_p0  ;;  %p177_p7 = scmp.lt.s32.totalorder %s1494_s23, 3 }
   0xd   : > { %s1868_s28 = scalar_select %p1578_p4, 1, 0 }
   0xe   : > { %s1869_s29 = scalar_select %p1583_p6, 1, 0 }
   0xf   : > { %p1588_p8 = pnand %p1050_p5, %p177_p7  ;;  %s1496_s6 = smov [#allocation6]  }
  0x10   : > { %s189_s7 = sshll.u32 %s1496_s6, 4  ;;  %s1497_s9 = smov [#allocation8]   ;;  %s1592_s7 = int_to_ptr.vmem [resolvable:$true] %s189_s7 }
  0x11   : > { %p1211_p9 = pneg %p1588_p8  ;;  %s205_s10 = sshll.u32 %s1497_s9, 4  ;;  %s1603_s10 = int_to_ptr.vmem [resolvable:$true] %s205_s10 }
  0x12   : > { %s1322_s13 = scalar_lea.hbm %s1856_s1, 1024 }
  0x13   : > { %p1599_p11 = pnand %p1211_p9, %p1568_p1  ;;  %p1323_p12 = scmp.ne.s32.totalorder %s1856_s1, %s1322_s13 }
  0x14   : > { %p1329_p5 = scmp.lt.u32.totalorder %s1322_s13, %s1856_s1 }
  0x15   : > { %p1324_p13 = pneg %p1599_p11 }
  0x17   : > { %p1325_p0 = pnand %p1324_p13, %p1323_p12 }
  0x19   : > { %p1326_p3 = pneg %p1325_p0 }
  0x1b   : > { %p1331_p7 = pnand %p1329_p5, %p1326_p3 }
  0x1d   : > { %1334 = shalt.err (!%p1331_p7)
}
  0x1e   : > { %s1335_s24 = scalar_lea.vmem %s1592_s7, 1024  ;;  %p1343_p1 = scmp.lt.s32.totalorder %s1592_s7, %s1592_s7 }
  0x1f   : > { %p1336_p9 = scmp.ne.s32.totalorder %s1592_s7, %s1335_s24  ;;  %p1344_p12 = scmp.lt.s32.totalorder %s1335_s24, %s1335_s24 }
  0x21   : > { %p1338_p10 = pnand %p1336_p9, %p1324_p13  ;;  %p1345_p0 = por %p1344_p12, %p1343_p1 }
  0x23   : > { %p1339_p6 = pneg %p1338_p10 }
  0x25   : > { %p1346_p4 = pnand %p1345_p0, %p1339_p6 }
  0x27   : > { %1349 = shalt.err (!%p1346_p4)
}
  0x28   : > { %s1864_s25 = smov 64   ;;  %s1499_s6 = smov 4  }
  0x29   : > { %1214 = dma.hbm_to_vmem [thread:$0]  (!%p1599_p11), %s1856_s1, 1024, %s1592_s7, [#allocation7], %s1864_s25, %s1864_s25, %s1499_s6  }
  0x2a   : > { %s1350_s14 = scalar_lea.hbm %s1858_s3, 1024 }
  0x2b   : > { %p1351_p1 = scmp.ne.s32.totalorder %s1858_s3, %s1350_s14  ;;  %p1357_p10 = scmp.lt.u32.totalorder %s1350_s14, %s1858_s3 }
  0x2d   : > { %p1353_p4 = pnand %p1351_p1, %p1324_p13 }
  0x2f   : > { %p1354_p6 = pneg %p1353_p4 }
  0x31   : > { %p1359_p3 = pnand %p1357_p10, %p1354_p6 }
  0x33   : > { %1362 = shalt.err (!%p1359_p3)
}
  0x34   : > { %s1363_s7 = scalar_lea.vmem %s1603_s10, 1024  ;;  %p1371_p12 = scmp.lt.s32.totalorder %s1603_s10, %s1603_s10 }
  0x35   : > { %p1364_p5 = scmp.ne.s32.totalorder %s1603_s10, %s1363_s7  ;;  %p1372_p0 = scmp.lt.s32.totalorder %s1363_s7, %s1363_s7 }
  0x37   : > { %p1366_p7 = pnand %p1364_p5, %p1324_p13  ;;  %p1373_p1 = por %p1372_p0, %p1371_p12 }
  0x39   : > { %p1367_p9 = pneg %p1366_p7 }
  0x3b   : > { %p1374_p4 = pnand %p1373_p1, %p1367_p9 }
  0x3d   : > { %1377 = shalt.err (!%p1374_p4)
}
  0x3e   : > { %1217 = dma.hbm_to_vmem [thread:$0]  (!%p1599_p11), %s1858_s3, 1024, %s1603_s10, [#allocation7], %s1864_s25, %s1864_s25, %s1499_s6  }
  0x3f   : > { %s34_s8 = sadd.s32 1, %s1490_s22  ;;  %s43_s12 = sadd.s32 1, %s1482_s20 }
  0x40   : > { %p36_p13 = scmp.ge.s32.totalorder %s34_s8, 2  ;;  %p50_p6 = scmp.ne.s32.totalorder %s1482_s20, %s1478_s19 }
  0x41   : > { %p51_p10 = scmp.eq.s32.totalorder %s1494_s23, 0  ;;  %p1228_p3 = scmp.lt.s32.totalorder %s1494_s23, 2 }
  0x42   : > { %s1886_s8 = smov (%p36_p13, %s34_s8), 0  ;;  %p1673_p7 = por %p1572_p2, %p50_p6 }
  0x43   : > { %p52_p5 = por %p51_p10, %p50_p6  ;;  %s38_s14 = ssub.s32 %s1490_s22, %s1886_s8 }
  0x44   : > { %s1872_s13 = scalar_select %p1673_p7, 1, 0 }
  0x45   : > { %s222_s15 = sand.u32 1, %s1482_s20   ;;  %p41_p9 = scmp.eq.s32.totalorder %s38_s14, 0 }
  0x46   : > { %s1054_s10 = sshll.u32 %s222_s15, 7  ;;  %s1097_s16 = sshll.u32 %s1490_s22, 11 }
  0x47   : > { %s1682_s17 = scalar_select %p41_p9, %s1482_s20, %s43_s12  }
  0x48   : > { %s1687_s9 = scalar_lea.hbm %s1855_s0, %s1097_s16  ;;  %s226_s27 = scalar_lea.vmem [#allocation3], %s1054_s10 }
  0x49   : > { %s235_s11 = sshll.u32 %s226_s27, 4  ;;  %p1691_p2 = pnand %p1228_p3, %p52_p5  ;;  %s1695_s11 = int_to_ptr.vmem [resolvable:$true] %s235_s11 }
  0x4a   : > { %s1697_s12 = scalar_lea.sflag [#allocation4], %s222_s15  ;;  %s1378_s14 = scalar_lea.hbm %s1687_s9, 2048 }
  0x4b   : > { %p1379_p11 = scmp.ne.s32.totalorder %s1687_s9, %s1378_s14  ;;  %p1380_p12 = pneg %p1691_p2 }
  0x4c   : > { %s1383_s24 = scalar_lea.hbm %s1855_s0, 4096  ;;  %p1384_p4 = scmp.lt.u32.totalorder %s1687_s9, %s1855_s0 }
  0x4d   : > { %p1381_p0 = pnand %p1380_p12, %p1379_p11  ;;  %p1385_p13 = scmp.lt.u32.totalorder %s1383_s24, %s1378_s14 }
  0x4e   : > { %p1387_p10 = scmp.lt.u32.totalorder %s1378_s14, %s1687_s9 }
  0x4f   : > { %p1382_p1 = pneg %p1381_p0  ;;  %p1386_p6 = por %p1385_p13, %p1384_p4 }
  0x51   : > { %p1388_p3 = por %p1387_p10, %p1386_p6 }
  0x53   : > { %p1389_p5 = pnand %p1388_p3, %p1382_p1 }
  0x55   : > { %1392 = shalt.err (!%p1389_p5)
}
  0x56   : > { %s1393_s15 = scalar_lea.vmem %s1695_s11, 2048  ;;  %s1500_s10 = smov [#allocation3]  }
  0x57   : > { %p1394_p9 = scmp.ne.s32.totalorder %s1695_s11, %s1393_s15  ;;  %s1398_s16 = sshll.u32 %s1500_s10, 4  ;;  %s1399_s16 = int_to_ptr.vmem [resolvable:$false] %s1398_s16 }
  0x58   : > { %s1400_s7 = scalar_lea.vmem %s1399_s16, 4096  ;;  %p1401_p7 = scmp.lt.s32.totalorder %s1695_s11, %s1399_s16 }
  0x59   : > { %p1396_p11 = pnand %p1394_p9, %p1380_p12  ;;  %p1402_p4 = scmp.lt.s32.totalorder %s1400_s7, %s1393_s15 }
  0x5b   : > { %p1397_p0 = pneg %p1396_p11  ;;  %p1403_p13 = por %p1402_p4, %p1401_p7 }
  0x5d   : > { %p1404_p6 = pnand %p1403_p13, %p1397_p0 }
  0x5f   : > { %1407 = shalt.err (!%p1404_p6)
}
  0x60   : > { %s1874_s14 = smov 64   ;;  %247 = sbr.rel (%p1588_p8) target bundleno = 709 (0x2c5), region = 40 }
  0x61   : > { %1221 = dma.hbm_to_vmem [thread:$0]  (!%p1691_p2), %s1687_s9, 2048, %s1695_s11, %s1697_s12, %s1874_s14, %s1874_s14, %s1499_s6  }
  0x62   : > { %s1731_s24 = sand.u32 (!%p1588_p8), 1, %s1478_s19   ;;  %p1875_p7 = scmp.ne.s32.totalorder (!%p1588_p8), %s1868_s28, 0 }
  0x63   : > { %s1058_s27 = sshll.u32 (!%p1588_p8), %s1731_s24, 7  ;;  %s250_s15 = scalar_lea.sflag (!%p1588_p8), [#allocation4], %s1731_s24 }
  0x64   : > { %s1735_s10 = scalar_lea.vmem (!%p1588_p8), [#allocation3], %s1058_s27 }
  0x67   : > { %1461 = dma.done.wait (%p1875_p7), %s250_s15, 2048  }
  0x68   : > { %1463 = vsyncadd (%p1875_p7), %s250_s15, 4294965248  ;;  %p1876_p2 = scmp.ne.s32.totalorder %s1866_s26, 0 }
  0x6a   : > { %1465 = dma.done.wait (%p1876_p2), [#allocation7], 2048  }
  0x6b   : > { %1467 = vsyncadd (%p1876_p2), [#allocation7], 4294965248  ;;  %v1286_v0 = vld [vmem:[#allocation6] sm:$0xff]   ;;  %v1287_v1 = vld [vmem:[#allocation6 + $0x8] sm:$0xff]   ;;  %v1501_v24 = vmov 0.0   ;;  %vm1502_vm0 = vmmov 0  }
  0x6c   : > { %1131 = vmatprep.subr.bf16.mxu0 %v1286_v0  ;;  %v1288_v2 = vld [vmem:[#allocation6 + $0x10] sm:$0xff]   ;;  %v1289_v3 = vld [vmem:[#allocation6 + $0x18] sm:$0xff]   ;;  %v1294_v4 = vld [vmem:[%s1735_s10] sm:$0xff]   ;;  %293 = vst [vmem:[#allocation2] sm:$0x1] %v1501_v24  ;;  %1179 = vmatprep.subr.bf16.mxu1 %v1501_v24  ;;  %s1094_s6 = sshll.u32 %s1486_s21, 4 }
  0x6d   : > { %1132 = vmatpush3.bf16.msra.mxu0 %v1286_v0  ;;  %1147 = vmatprep.mubr.bf16.mxu0 %v1294_v4  ;;  %v1290_v5 = vld [vmem:[#allocation6 + $0x20] sm:$0xff]   ;;  %v1291_v6 = vld [vmem:[#allocation6 + $0x28] sm:$0xff]   ;;  %v1292_v7 = vld [vmem:[#allocation6 + $0x30] sm:$0xff]   ;;  %s286_s9 = scalar_lea.vmem [#allocation9], %s1731_s24  ;;  %s1806_s7 = scalar_lea.hbm %s1860_s5, %s1094_s6 }
  0x6e   : > { %1133 = vmatprep.subr.bf16.mxu0 %v1287_v1  ;;  %v1293_v8 = vld [vmem:[#allocation6 + $0x38] sm:$0xff]   ;;  %v1295_v9 = vld [vmem:[%s1735_s10 + $0x8] sm:$0xff]   ;;  %v1296_v10 = vld [vmem:[%s1735_s10 + $0x10] sm:$0xff]   ;;  %1195 = vmatprep.mubr.msk.bf16.mxu1 %vm1502_vm0, %v1501_v24  ;;  %s952_s11 = sshll.u32 %s286_s9, 4  ;;  %s940_s14 = scalar_lea.sflag [#allocation5], %s1731_s24  ;;  %s1808_s11 = int_to_ptr.vmem [resolvable:$true] %s952_s11 }
  0x6f   : > { %v1297_v11 = vld [vmem:[%s1735_s10 + $0x18] sm:$0xff]   ;;  %v1298_v12 = vld [vmem:[%s1735_s10 + $0x20] sm:$0xff]   ;;  %v1299_v13 = vld [vmem:[%s1735_s10 + $0x28] sm:$0xff]   ;;  %s1408_s21 = scalar_lea.vmem %s1808_s11, 16  ;;  %p1877_p12 = scmp.ne.s32.totalorder %s1872_s13, 0 }
  0x70   : > { %v1300_v14 = vld [vmem:[%s1735_s10 + $0x30] sm:$0xff]   ;;  %v1301_v15 = vld [vmem:[%s1735_s10 + $0x38] sm:$0xff]   ;;  %v1302_v16 = vld [vmem:[%s1735_s10 + $0x40] sm:$0xff]   ;;  %p1409_p8 = scmp.ne.s32.totalorder %s1808_s11, %s1408_s21  ;;  %s1503_s27 = smov [#allocation9]  }
  0x71   : > { %1134 = vmatpush3.bf16.msra.mxu0 %v1287_v1  ;;  %v1303_v17 = vld [vmem:[%s1735_s10 + $0x48] sm:$0xff]   ;;  %v1304_v18 = vld [vmem:[%s1735_s10 + $0x50] sm:$0xff]   ;;  %v1305_v19 = vld [vmem:[%s1735_s10 + $0x58] sm:$0xff]   ;;  %s1412_s15 = sshll.u32 %s1503_s27, 4  ;;  %s1413_s15 = int_to_ptr.vmem [resolvable:$false] %s1412_s15 }
  0x72   : > { %1135 = vmatprep.subr.bf16.mxu0 %v1288_v2  ;;  %v1306_v20 = vld [vmem:[%s1735_s10 + $0x60] sm:$0xff]   ;;  %v1307_v21 = vld [vmem:[%s1735_s10 + $0x68] sm:$0xff]   ;;  %v1308_v22 = vld [vmem:[%s1735_s10 + $0x70] sm:$0xff]   ;;  %p1410_p1 = pnand %p1409_p8, %p1877_p12  ;;  %p1415_p3 = scmp.lt.s32.totalorder %s1808_s11, %s1413_s15 }
  0x73   : > { %v1309_v23 = vld [vmem:[%s1735_s10 + $0x78] sm:$0xff]   ;;  %v1310_v25 = vld [vmem:[#allocation8] sm:$0xff]   ;;  %v1311_v26 = vld [vmem:[#allocation8 + $0x8] sm:$0xff]   ;;  %s1414_s10 = scalar_lea.vmem %s1413_s15, 32 }
  0x74   : > { %1180 = vmatpush3.bf16.msra.mxu1 %v1310_v25  ;;  %v1312_v27 = vld [vmem:[#allocation8 + $0x10] sm:$0xff]   ;;  %v1313_v28 = vld [vmem:[#allocation8 + $0x18] sm:$0xff]   ;;  %v1314_v29 = vld [vmem:[#allocation8 + $0x20] sm:$0xff]   ;;  %p1411_p10 = pneg %p1410_p1  ;;  %p1416_p5 = scmp.lt.s32.totalorder %s1414_s10, %s1408_s21 }
  0x75   : > { %1136 = vmatpush3.bf16.msra.mxu0 %v1288_v2  ;;  %1181 = vmatprep.subr.bf16.mxu1 %v1501_v24  ;;  %v1315_v30 = vld [vmem:[#allocation8 + $0x28] sm:$0xff]   ;;  %v1316_v31 = vld [vmem:[#allocation8 + $0x30] sm:$0xff]   ;;  %v1317_v32 = vld [vmem:[#allocation8 + $0x38] sm:$0xff]  }
  0x76   : > { %1137 = vmatprep.subr.bf16.mxu0 %v1289_v3  ;;  %v1764_v33 = vld [vmem:[%s1857_s2] ss:$0 sm:$0xff]  ;;  %p1417_p9 = por %p1416_p5, %p1415_p3 }
  0x78   : > { %1182 = vmatpush3.bf16.msra.mxu1 %v1311_v26  ;;  %p1418_p11 = pnand %p1417_p9, %p1411_p10 }
  0x79   : > { %1138 = vmatpush3.bf16.msra.mxu0 %v1289_v3  ;;  %1183 = vmatprep.subr.bf16.mxu1 %v1501_v24 }
  0x7a   : > { %1139 = vmatprep.subr.bf16.mxu0 %v1290_v5 }
  0x7c   : > { %1184 = vmatpush3.bf16.msra.mxu1 %v1312_v27 }
  0x7d   : > { %1140 = vmatpush3.bf16.msra.mxu0 %v1290_v5  ;;  %1185 = vmatprep.subr.bf16.mxu1 %v1501_v24 }
  0x7e   : > { %1141 = vmatprep.subr.bf16.mxu0 %v1291_v6 }
  0x80   : > { %1186 = vmatpush3.bf16.msra.mxu1 %v1313_v28 }
  0x81   : > { %1142 = vmatpush3.bf16.msra.mxu0 %v1291_v6  ;;  %1187 = vmatprep.subr.bf16.mxu1 %v1501_v24 }
  0x82   : > { %1143 = vmatprep.subr.bf16.mxu0 %v1292_v7 }
  0x84   : > { %1188 = vmatpush3.bf16.msra.mxu1 %v1314_v29 }
  0x85   : > { %1144 = vmatpush3.bf16.msra.mxu0 %v1292_v7  ;;  %1189 = vmatprep.subr.bf16.mxu1 %v1501_v24 }
  0x86   : > { %1145 = vmatprep.subr.bf16.mxu0 %v1293_v8 }
  0x88   : > { %1190 = vmatpush3.bf16.msra.mxu1 %v1315_v30 }
  0x89   : > { %1146 = vmatpush3.bf16.msra.mxu0 %v1293_v8  ;;  %1191 = vmatprep.subr.bf16.mxu1 %v1501_v24 }
  0x8c   : > { %1148 = vmatmul.mubr.bf16.vlgmr.msra.gmra.mrb[0].mxu0 %v1295_v9  ;;  %1192 = vmatpush3.bf16.msra.mxu1 %v1316_v31 }
  0x8d   : > { %1151 = vmatprep.mubr.bf16.mxu0 %v1296_v10  ;;  %1193 = vmatprep.subr.bf16.mxu1 %v1501_v24 }
  0x90   : > { %1194 = vmatpush3.bf16.msra.mxu1 %v1317_v32 }
  0x94   : > { %1152 = vmatmul.mubr.bf16.gmra.mrb[4].mxu0 %v1297_v11 }
  0x95   : > { %1155 = vmatprep.mubr.bf16.mxu0 %v1298_v12 }
  0x9c   : > { %1156 = vmatmul.mubr.bf16.gmra.mrb[8].mxu0 %v1299_v13 }
  0x9d   : > { %1159 = vmatprep.mubr.bf16.mxu0 %v1300_v14 }
  0xa4   : > { %1160 = vmatmul.mubr.bf16.gmra.mrb[12].mxu0 %v1301_v15 }
  0xa5   : > { %1163 = vmatprep.mubr.bf16.mxu0 %v1302_v16 }
  0xac   : > { %1164 = vmatmul.mubr.bf16.gmra.mrb[16].mxu0 %v1303_v17 }
  0xad   : > { %1167 = vmatprep.mubr.bf16.mxu0 %v1304_v18 }
  0xb4   : > { %1168 = vmatmul.mubr.bf16.gmra.mrb[20].mxu0 %v1305_v19 }
  0xb5   : > { %1171 = vmatprep.mubr.bf16.mxu0 %v1306_v20 }
  0xbc   : > { %1172 = vmatmul.mubr.bf16.gmra.mrb[24].mxu0 %v1307_v21 }
  0xbd   : > { %1175 = vmatprep.mubr.bf16.mxu0 %v1308_v22 }
  0xc4   : > { %1176 = vmatmul.mubr.bf16.gmra.mrb[28].mxu0 %v1309_v23 }
 0x15f   : > { %v1149_v34 = vpop.f32.mrb[0].mxu0 }
 0x160   : > { %v536_v35 = vadd.f32 %v1149_v34, %v1764_v33  ;;  %v527_v36 = vpop.f32.mrb[1].mxu0 }
 0x161   : > { %v528_v37 = vadd.f32 %v1764_v33, %v527_v36  ;;  %v1150_v38 = vpop.f32.mrb[2].mxu0 }
 0x162   : > { %v656_v39 = vmax.f32 %v536_v35, 0.0  ;;  %v539_v40 = vadd.f32 %v1150_v38, %v1764_v33  ;;  %v530_v41 = vpop.f32.mrb[3].mxu0 }
 0x163   : > { %v654_v42 = vmax.f32 %v528_v37, 0.0  ;;  %v531_v43 = vadd.f32 %v1764_v33, %v530_v41 }
 0x164   : > { %v657_v44 = vmax.f32 %v539_v40, 0.0  ;;  %v688_v45 = vmax.f32 %v656_v39, 1e-06 }
 0x165   : > { %v686_v46 = vmax.f32 %v654_v42, 1e-06  ;;  %v655_v47 = vmax.f32 %v531_v43, 0.0 }
 0x166   : > { %v689_v48 = vmax.f32 %v657_v44, 1e-06  ;;  %v721_v54 = vmul.f32 %v688_v45, %v688_v45 }
 0x167   : > { %v719_v49 = vmul.f32 %v686_v46, %v686_v46  ;;  %v687_v50 = vmax.f32 %v655_v47, 1e-06  ;;  %v1153_v51 = vpop.f32.mrb[4].mxu0 }
 0x168   : > { %v552_v52 = vadd.f32 %v1153_v51, %v1764_v33  ;;  %v543_v53 = vpop.f32.mrb[5].mxu0  ;;  %v722_v58 = vmul.f32 %v689_v48, %v689_v48  ;;  %v753_v4 = vmul.f32 %v721_v54, %v688_v45 }
 0x169   : > { %v720_v55 = vmul.f32 %v687_v50, %v687_v50  ;;  %v544_v56 = vadd.f32 %v1764_v33, %v543_v53  ;;  %v1154_v57 = vpop.f32.mrb[6].mxu0  ;;  %v751_v62 = vmul.f32 %v719_v49, %v686_v46 }
 0x16a   : > { %v660_v59 = vmax.f32 %v552_v52, 0.0  ;;  %v555_v60 = vadd.f32 %v1154_v57, %v1764_v33  ;;  %v546_v61 = vpop.f32.mrb[7].mxu0  ;;  %v754_v9 = vmul.f32 %v722_v58, %v689_v48 }
 0x16b   : > { %v752_v63 = vmul.f32 %v720_v55, %v687_v50  ;;  %v658_v0 = vmax.f32 %v544_v56, 0.0  ;;  %v547_v1 = vadd.f32 %v1764_v33, %v546_v61 }
 0x16c   : > { %v692_v2 = vmax.f32 %v660_v59, 1e-06  ;;  %v661_v3 = vmax.f32 %v555_v60, 0.0 }
 0x16d   : > { %v783_v5 = vadd.f32 %v752_v63, %v751_v62  ;;  %v690_v6 = vmax.f32 %v658_v0, 1e-06  ;;  %v659_v7 = vmax.f32 %v547_v1, 0.0 }
 0x16e   : > { %v693_v8 = vmax.f32 %v661_v3, 1e-06  ;;  %v725_v14 = vmul.f32 %v692_v2, %v692_v2 }
 0x16f   : > { %v784_v10 = vadd.f32 %v783_v5, %v753_v4  ;;  %v723_v11 = vmul.f32 %v690_v6, %v690_v6  ;;  %v691_v12 = vmax.f32 %v659_v7, 1e-06  ;;  %v1157_v13 = vpop.f32.mrb[8].mxu0 }
 0x170   : > { %v568_v15 = vadd.f32 %v1157_v13, %v1764_v33  ;;  %v559_v16 = vpop.f32.mrb[9].mxu0  ;;  %v726_v22 = vmul.f32 %v693_v8, %v693_v8  ;;  %v757_v32 = vmul.f32 %v725_v14, %v692_v2 }
 0x171   : > { %v755_v17 = vmul.f32 %v723_v11, %v690_v6  ;;  %v785_v18 = vadd.f32 %v784_v10, %v754_v9  ;;  %v724_v19 = vmul.f32 %v691_v12, %v691_v12  ;;  %v560_v20 = vadd.f32 %v1764_v33, %v559_v16  ;;  %v1158_v21 = vpop.f32.mrb[10].mxu0 }
 0x172   : > { %v664_v23 = vmax.f32 %v568_v15, 0.0  ;;  %v571_v24 = vadd.f32 %v1158_v21, %v1764_v33  ;;  %v562_v25 = vpop.f32.mrb[11].mxu0  ;;  %v758_v38 = vmul.f32 %v726_v22, %v693_v8 }
 0x173   : > { %v786_v26 = vadd.f32 %v785_v18, %v755_v17  ;;  %v756_v27 = vmul.f32 %v724_v19, %v691_v12  ;;  %v662_v28 = vmax.f32 %v560_v20, 0.0  ;;  %v563_v29 = vadd.f32 %v1764_v33, %v562_v25 }
 0x174   : > { %v696_v30 = vmax.f32 %v664_v23, 1e-06  ;;  %v665_v31 = vmax.f32 %v571_v24, 0.0 }
 0x175   : > { %v787_v34 = vadd.f32 %v786_v26, %v756_v27  ;;  %v694_v35 = vmax.f32 %v662_v28, 1e-06  ;;  %v663_v36 = vmax.f32 %v563_v29, 0.0 }
 0x176   : > { %v697_v37 = vmax.f32 %v665_v31, 1e-06  ;;  %v729_v43 = vmul.f32 %v696_v30, %v696_v30 }
 0x177   : > { %v788_v39 = vadd.f32 %v787_v34, %v757_v32  ;;  %v727_v40 = vmul.f32 %v694_v35, %v694_v35  ;;  %v695_v41 = vmax.f32 %v663_v36, 1e-06  ;;  %v1161_v42 = vpop.f32.mrb[12].mxu0 }
 0x178   : > { %v584_v44 = vadd.f32 %v1161_v42, %v1764_v33  ;;  %v575_v45 = vpop.f32.mrb[13].mxu0  ;;  %v730_v51 = vmul.f32 %v697_v37, %v697_v37  ;;  %v761_v61 = vmul.f32 %v729_v43, %v696_v30 }
 0x179   : > { %v759_v46 = vmul.f32 %v727_v40, %v694_v35  ;;  %v789_v47 = vadd.f32 %v788_v39, %v758_v38  ;;  %v728_v48 = vmul.f32 %v695_v41, %v695_v41  ;;  %v576_v49 = vadd.f32 %v1764_v33, %v575_v45  ;;  %v1162_v50 = vpop.f32.mrb[14].mxu0 }
 0x17a   : > { %v668_v52 = vmax.f32 %v584_v44, 0.0  ;;  %v587_v53 = vadd.f32 %v1162_v50, %v1764_v33  ;;  %v578_v54 = vpop.f32.mrb[15].mxu0  ;;  %v762_v2 = vmul.f32 %v730_v51, %v697_v37 }
 0x17b   : > { %v790_v55 = vadd.f32 %v789_v47, %v759_v46  ;;  %v760_v56 = vmul.f32 %v728_v48, %v695_v41  ;;  %v666_v57 = vmax.f32 %v576_v49, 0.0  ;;  %v579_v58 = vadd.f32 %v1764_v33, %v578_v54 }
 0x17c   : > { %v700_v59 = vmax.f32 %v668_v52, 1e-06  ;;  %v669_v60 = vmax.f32 %v587_v53, 0.0 }
 0x17d   : > { %v791_v62 = vadd.f32 %v790_v55, %v760_v56  ;;  %v698_v63 = vmax.f32 %v666_v57, 1e-06  ;;  %v667_v0 = vmax.f32 %v579_v58, 0.0 }
 0x17e   : > { %v701_v1 = vmax.f32 %v669_v60, 1e-06  ;;  %v733_v7 = vmul.f32 %v700_v59, %v700_v59 }
 0x17f   : > { %v792_v3 = vadd.f32 %v791_v62, %v761_v61  ;;  %v731_v4 = vmul.f32 %v698_v63, %v698_v63  ;;  %v699_v5 = vmax.f32 %v667_v0, 1e-06  ;;  %v1165_v6 = vpop.f32.mrb[16].mxu0 }
 0x180   : > { %v600_v8 = vadd.f32 %v1165_v6, %v1764_v33  ;;  %v591_v9 = vpop.f32.mrb[17].mxu0  ;;  %v734_v15 = vmul.f32 %v701_v1, %v701_v1  ;;  %v765_v25 = vmul.f32 %v733_v7, %v700_v59 }
 0x181   : > { %v763_v10 = vmul.f32 %v731_v4, %v698_v63  ;;  %v793_v11 = vadd.f32 %v792_v3, %v762_v2  ;;  %v732_v12 = vmul.f32 %v699_v5, %v699_v5  ;;  %v592_v13 = vadd.f32 %v1764_v33, %v591_v9  ;;  %v1166_v14 = vpop.f32.mrb[18].mxu0 }
 0x182   : > { %v672_v16 = vmax.f32 %v600_v8, 0.0  ;;  %v603_v17 = vadd.f32 %v1166_v14, %v1764_v33  ;;  %v594_v18 = vpop.f32.mrb[19].mxu0  ;;  %v766_v30 = vmul.f32 %v734_v15, %v701_v1 }
 0x183   : > { %v794_v19 = vadd.f32 %v793_v11, %v763_v10  ;;  %v764_v20 = vmul.f32 %v732_v12, %v699_v5  ;;  %v670_v21 = vmax.f32 %v592_v13, 0.0  ;;  %v595_v22 = vadd.f32 %v1764_v33, %v594_v18 }
 0x184   : > { %v704_v23 = vmax.f32 %v672_v16, 1e-06  ;;  %v673_v24 = vmax.f32 %v603_v17, 0.0 }
 0x185   : > { %v795_v26 = vadd.f32 %v794_v19, %v764_v20  ;;  %v702_v27 = vmax.f32 %v670_v21, 1e-06  ;;  %v671_v28 = vmax.f32 %v595_v22, 0.0 }
 0x186   : > { %v705_v29 = vmax.f32 %v673_v24, 1e-06  ;;  %v737_v36 = vmul.f32 %v704_v23, %v704_v23 }
 0x187   : > { %v796_v31 = vadd.f32 %v795_v26, %v765_v25  ;;  %v735_v32 = vmul.f32 %v702_v27, %v702_v27  ;;  %v703_v34 = vmax.f32 %v671_v28, 1e-06  ;;  %v1169_v35 = vpop.f32.mrb[20].mxu0 }
 0x188   : > { %v616_v37 = vadd.f32 %v1169_v35, %v1764_v33  ;;  %v607_v38 = vpop.f32.mrb[21].mxu0  ;;  %v738_v44 = vmul.f32 %v705_v29, %v705_v29  ;;  %v769_v54 = vmul.f32 %v737_v36, %v704_v23 }
 0x189   : > { %v767_v39 = vmul.f32 %v735_v32, %v702_v27  ;;  %v797_v40 = vadd.f32 %v796_v31, %v766_v30  ;;  %v736_v41 = vmul.f32 %v703_v34, %v703_v34  ;;  %v608_v42 = vadd.f32 %v1764_v33, %v607_v38  ;;  %v1170_v43 = vpop.f32.mrb[22].mxu0 }
 0x18a   : > { %v676_v45 = vmax.f32 %v616_v37, 0.0  ;;  %v619_v46 = vadd.f32 %v1170_v43, %v1764_v33  ;;  %v610_v47 = vpop.f32.mrb[23].mxu0  ;;  %v770_v59 = vmul.f32 %v738_v44, %v705_v29 }
 0x18b   : > { %v798_v48 = vadd.f32 %v797_v40, %v767_v39  ;;  %v768_v49 = vmul.f32 %v736_v41, %v703_v34  ;;  %v674_v50 = vmax.f32 %v608_v42, 0.0  ;;  %v611_v51 = vadd.f32 %v1764_v33, %v610_v47 }
 0x18c   : > { %v708_v52 = vmax.f32 %v676_v45, 1e-06  ;;  %v677_v53 = vmax.f32 %v619_v46, 0.0 }
 0x18d   : > { %v799_v55 = vadd.f32 %v798_v48, %v768_v49  ;;  %v706_v56 = vmax.f32 %v674_v50, 1e-06  ;;  %v675_v57 = vmax.f32 %v611_v51, 0.0 }
 0x18e   : > { %v709_v58 = vmax.f32 %v677_v53, 1e-06  ;;  %v741_v0 = vmul.f32 %v708_v52, %v708_v52 }
 0x18f   : > { %v800_v60 = vadd.f32 %v799_v55, %v769_v54  ;;  %v739_v61 = vmul.f32 %v706_v56, %v706_v56  ;;  %v707_v62 = vmax.f32 %v675_v57, 1e-06  ;;  %v1173_v63 = vpop.f32.mrb[24].mxu0 }
 0x190   : > { %v632_v1 = vadd.f32 %v1173_v63, %v1764_v33  ;;  %v623_v2 = vpop.f32.mrb[25].mxu0  ;;  %v742_v8 = vmul.f32 %v709_v58, %v709_v58  ;;  %v773_v18 = vmul.f32 %v741_v0, %v708_v52 }
 0x191   : > { %v771_v3 = vmul.f32 %v739_v61, %v706_v56  ;;  %v801_v4 = vadd.f32 %v800_v60, %v770_v59  ;;  %v740_v5 = vmul.f32 %v707_v62, %v707_v62  ;;  %v624_v6 = vadd.f32 %v1764_v33, %v623_v2  ;;  %v1174_v7 = vpop.f32.mrb[26].mxu0 }
 0x192   : > { %v680_v9 = vmax.f32 %v632_v1, 0.0  ;;  %v635_v10 = vadd.f32 %v1174_v7, %v1764_v33  ;;  %v626_v11 = vpop.f32.mrb[27].mxu0  ;;  %v774_v23 = vmul.f32 %v742_v8, %v709_v58  ;;  %v718_v8 = vld [vmem:[#allocation2] sm:$0x1] }
 0x193   : > { %v802_v12 = vadd.f32 %v801_v4, %v771_v3  ;;  %v772_v13 = vmul.f32 %v740_v5, %v707_v62  ;;  %v678_v14 = vmax.f32 %v624_v6, 0.0  ;;  %v627_v15 = vadd.f32 %v1764_v33, %v626_v11 }
 0x194   : > { %v712_v16 = vmax.f32 %v680_v9, 1e-06  ;;  %v681_v17 = vmax.f32 %v635_v10, 0.0 }
 0x195   : > { %v803_v19 = vadd.f32 %v802_v12, %v772_v13  ;;  %v710_v20 = vmax.f32 %v678_v14, 1e-06  ;;  %v679_v21 = vmax.f32 %v627_v15, 0.0 }
 0x196   : > { %v713_v22 = vmax.f32 %v681_v17, 1e-06  ;;  %v745_v28 = vmul.f32 %v712_v16, %v712_v16 }
 0x197   : > { %v804_v24 = vadd.f32 %v803_v19, %v773_v18  ;;  %v743_v25 = vmul.f32 %v710_v20, %v710_v20  ;;  %v711_v26 = vmax.f32 %v679_v21, 1e-06  ;;  %v1177_v27 = vpop.f32.mrb[28].mxu0  ;;  %v849_v19 = vld [vmem:[%s1859_s4] sm:$0x1] }
 0x198   : > { %v648_v29 = vadd.f32 %v1177_v27, %v1764_v33  ;;  %v639_v30 = vpop.f32.mrb[29].mxu0  ;;  %v746_v37 = vmul.f32 %v713_v22, %v713_v22  ;;  %v777_v45 = vmul.f32 %v745_v28, %v712_v16 }
 0x199   : > { %v775_v31 = vmul.f32 %v743_v25, %v710_v20  ;;  %v805_v32 = vadd.f32 %v804_v24, %v774_v23  ;;  %v744_v34 = vmul.f32 %v711_v26, %v711_v26  ;;  %v640_v35 = vadd.f32 %v1764_v33, %v639_v30  ;;  %v1178_v36 = vpop.f32.mrb[30].mxu0 }
 0x19a   : > { %v684_v38 = vmax.f32 %v648_v29, 0.0  ;;  %v651_v39 = vadd.f32 %v1178_v36, %v1764_v33  ;;  %v642_v40 = vpop.f32.mrb[31].mxu0  ;;  %v778_v51 = vmul.f32 %v746_v37, %v713_v22 }
 0x19b   : > { %v806_v41 = vadd.f32 %v805_v32, %v775_v31  ;;  %v776_v42 = vmul.f32 %v744_v34, %v711_v26  ;;  %v682_v43 = vmax.f32 %v640_v35, 0.0  ;;  %v643_v44 = vadd.f32 %v1764_v33, %v642_v40 }
 0x19c   : > { %v685_v46 = vmax.f32 %v651_v39, 0.0  ;;  %v716_v48 = vmax.f32 %v684_v38, 1e-06 }
 0x19d   : > { %v807_v47 = vadd.f32 %v806_v41, %v776_v42  ;;  %v714_v49 = vmax.f32 %v682_v43, 1e-06  ;;  %v683_v50 = vmax.f32 %v643_v44, 0.0 }
 0x19e   : > { %v717_v54 = vmax.f32 %v685_v46, 1e-06  ;;  %v749_v56 = vmul.f32 %v716_v48, %v716_v48 }
 0x19f   : > { %v808_v52 = vadd.f32 %v807_v47, %v777_v45  ;;  %v747_v53 = vmul.f32 %v714_v49, %v714_v49  ;;  %v715_v55 = vmax.f32 %v683_v50, 1e-06 }
 0x1a0   : > { %v750_v61 = vmul.f32 %v717_v54, %v717_v54  ;;  %v781_v63 = vmul.f32 %v749_v56, %v716_v48 }
 0x1a1   : > { %v779_v57 = vmul.f32 %v747_v53, %v714_v49  ;;  %v809_v58 = vadd.f32 %v808_v52, %v778_v51  ;;  %v748_v59 = vmul.f32 %v715_v55, %v715_v55 }
 0x1a2   : > { %v782_v0 = vmul.f32 %v750_v61, %v717_v54 }
 0x1a3   : > { %v810_v60 = vadd.f32 %v809_v58, %v779_v57  ;;  %v780_v62 = vmul.f32 %v748_v59, %v715_v55 }
 0x1a5   : > { %v811_v33 = vadd.f32 %v810_v60, %v780_v62 }
 0x1a7   : > { %v812_v1 = vadd.f32 %v811_v33, %v781_v63 }
 0x1a9   : > { %v813_v2 = vadd.f32 %v812_v1, %v782_v0 }
 0x1ab   : > { %v814_v3 = vrot.slane %v813_v2, 4 }
 0x1ad   : > { %v815_v4 = vadd.f32 %v814_v3, %v813_v2 }
 0x1af   : > { %v816_v5 = vrot.slane %v815_v4, 2 }
 0x1b1   : > { %v817_v6 = vadd.f32 %v816_v5, %v815_v4 }
 0x1b3   : > { %v818_v7 = vrot.slane %v817_v6, 1 }
 0x1b5   : > { %v819_v9 = vadd.f32 %v818_v7, %v817_v6 }
 0x1b7   : > { %v820_v10 = vadd.f32 %v819_v9, %v718_v8 }
 0x1b9   : > { %821 = vst [vmem:[#allocation2] sm:$0x1] %v820_v10 }
 0x1c0   : > { %v825_v11 = vld [vmem:[#allocation2] sm:$0x1] }
 0x1c1   : > { %v826_v12 = vmul.f32 0.00390625, %v825_v11 }
 0x1c3   : > { %1318 = vlog2.f32 %v826_v12 }
 0x1cd   : > { %v1319_v13 = vpop.eup %1318 }
 0x1ce   : > { %v828_v14 = vmul.f32 0.6931472, %v1319_v13 }
 0x1d0   : > { %v829_v15 = vmul.f32 0.33333334, %v828_v14 }
 0x1d2   : > { %v830_v16 = vmul.f32 1.442695, %v829_v15 }
 0x1d4   : > { %1320 = vpow2.f32 %v830_v16 }
 0x1de   : > { %v1321_v17 = vpop.eup %1320 }
 0x1df   : > { %v832_v18 = vpack.c.bf16 %v1321_v17, %v1321_v17 }
 0x1e1   : > { %1196 = vmatmul.mubr.bf16.vlgmr.msra.gmra.mrb[0].mxu1 %v832_v18 }
 0x2b4   : > { %v932_v20 = vpop.f32.mrb[0].mxu1 }
 0x2b5   : > { %v933_v21 = vadd.f32 %v932_v20, %v849_v19  ;;  %v1197_v22 = vpop.f32.mrb[1].mxu1 }
 0x2b6   : > { %v935_v23 = vpop.f32.mrb[2].mxu1 }
 0x2b7   : > { %938 = vst [vmem:[%s286_s9] sm:$0x1] %v933_v21  ;;  %v1198_v24 = vpop.f32.mrb[3].mxu1 }
 0x2b8   : > { %1421 = shalt.err (!%p1418_p11)
}
 0x2b9   : > { %s1422_s24 = scalar_lea.hbm %s1806_s7, 16  ;;  %s1426_s30 = scalar_lea.hbm %s1860_s5, 32 }
 0x2ba   : > { %p1423_p0 = scmp.ne.s32.totalorder %s1806_s7, %s1422_s24  ;;  %p1427_p6 = scmp.lt.u32.totalorder %s1806_s7, %s1860_s5 }
 0x2bb   : > { %p1428_p7 = scmp.lt.u32.totalorder %s1426_s30, %s1422_s24  ;;  %p1430_p8 = scmp.lt.u32.totalorder %s1422_s24, %s1806_s7 }
 0x2bc   : > { %p1424_p4 = pnand %p1423_p0, %p1877_p12 }
 0x2bd   : > { %p1429_p2 = por %p1428_p7, %p1427_p6 }
 0x2be   : > { %p1425_p13 = pneg %p1424_p4 }
 0x2bf   : > { %p1431_p1 = por %p1430_p8, %p1429_p2 }
 0x2c1   : > { %p1432_p10 = pnand %p1431_p1, %p1425_p13 }
 0x2c3   : > { %1435 = shalt.err (!%p1432_p10)
}
 0x2c4   : > { %1209 = dma.vmem_to_hbm [thread:$0]  (%p1877_p12), %s1808_s11, 16, %s1806_s7, %s940_s14  }
 0x2c5 PF: > { %s964_s9 = sand.u32 1, %s1474_s18   ;;  %p1878_p3 = scmp.ne.s32.totalorder %s1869_s29, 0 }
 0x2c6   : > { %p1879_p5 = scmp.ge.s32.totalorder %s1494_s23, 2  ;;  %s965_s12 = scalar_lea.sflag [#allocation5], %s964_s9 }
 0x2c8   : > { %p1223_p9 = pnand %p1879_p5, %p1878_p3 }
 0x2ca   : > { %1469 = dma.done.wait (!%p1223_p9), %s965_s12, 16  }
 0x2cb   : > { %1471 = vsyncadd (!%p1223_p9), %s965_s12, 4294967280  ;;  %s22_s23 = sadd.s32 1, %s1494_s23   ;;  %s1880_s18 = smov %s1478_s19 }
 0x2cc   : > { %p19_p11 = scmp.ge.s32.totalorder %s22_s23, 4   ;;  %s1881_s19 = smov %s1482_s20 }
 0x2cd   : > { %s1882_s20 = smov %s1682_s17  ;;  %s1883_s21 = smov %s1490_s22 }
 0x2ce   : > { %s1884_s22 = smov %s1886_s8  ;;  %21 = sbr.rel (!%p19_p11) target bundleno = 7 (0x7), region = 101 }
 0x2d5   :  { %969 = vsyncpa [#allocation4], 1 }
 0x2d6   :  { %971 = vsyncpa [#allocation4 + $0x1], 1 }
 0x2d7   :  { %972 = vsyncpa [#allocation7], 1 }
 0x2d8   :  { %973 = vsyncpa [#allocation5], 1 }
 0x2d9   :  { %975 = vsyncpa [#allocation5 + $0x1], 1 }

</bundles_post_ra>
